<compile_context>
chip_gen: v7x
topology: tpu7x:2x2x1
jax: 0.10.0
libtpu: 0.0.40
codegen_flags: <defaults>
</compile_context>

<pallas_src>
import jax
import jax.numpy as jnp
from jax.experimental import pallas as pl
from jax.experimental.pallas import tpu as pltpu


# --------------------------------------------------------------------------
# Kernel
# --------------------------------------------------------------------------
def discriminator_kernel(x_ref, w1_ref, w2_ref, aux_ref, o_ref):
    """Fused forward pass for one batch tile.

    x_ref  : (bm, num_inputs)  VMEM, source dtype (cast to MXU dtype in-kernel)
    w1_ref : (num_inputs, H)   VMEM, compute dtype
    w2_ref : (H, H)            VMEM, compute dtype
    aux_ref: (4, H)            VMEM f32: rows = [b1, b2, w3_row, b3(pad)]
    o_ref  : (1, bm)           VMEM f32 (lane-dense output row)
    """
    aux = aux_ref[...]                   # (4, H) f32, single vreg tile
    b1 = aux[0:1, :]                     # (1, H)
    b2 = aux[1:2, :]                     # (1, H)
    w3 = aux[2:3, :]                     # (1, H)
    b3 = aux[3:4, 0:1]                   # (1, 1)

    # In-kernel cast to the MXU operand dtype (no extra HBM pass for x).
    x = x_ref[...].astype(w1_ref.dtype)  # (bm, num_inputs)

    # Layers 1 & 2 on the MXU with f32 accumulation; activations in f32.
    h1 = jnp.tanh(
        jnp.dot(x, w1_ref[...], preferred_element_type=jnp.float32) + b1)
    h2 = jnp.tanh(
        jnp.dot(h1.astype(w2_ref.dtype), w2_ref[...],
                preferred_element_type=jnp.float32) + b2)

    # Layer 3: (bm,H)·(H,) as VPU broadcast-mul + XLU lane reduction,
    # then a tiny XLU transpose so the store is a lane-dense (1, bm) row.
    logit_col = jnp.sum(h2 * w3, axis=-1, keepdims=True)     # (bm, 1)
    logit_row = jnp.transpose(logit_col)                      # (1, bm)
    o_ref[...] = jax.nn.sigmoid(logit_row + b3).astype(o_ref.dtype)


# --------------------------------------------------------------------------
# VMEM accounting / tiling heuristics
# --------------------------------------------------------------------------
def _padded_vmem_bytes(shape, dtype):
    """Bytes of one VMEM block after (sublane, 128)-lane padding."""
    itemsize = jnp.dtype(dtype).itemsize
    sublane = 8 * max(1, 4 // itemsize)       # 8 for f32, 16 for bf16
    r = shape[-2] if len(shape) >= 2 else 1
    c = shape[-1]
    r_pad = -(-r // sublane) * sublane
    c_pad = -(-c // 128) * 128
    return r_pad * c_pad * itemsize


def _vmem_need_bytes(block_m, num_inputs, H, x_dtype, compute_dtype):
    """Padded VMEM footprint: double-buffered blocks + in-kernel live temps."""
    # Pipelined blocks (double-buffered): x tile and output row.
    pipelined = 2 * (_padded_vmem_bytes((block_m, num_inputs), x_dtype)
                     + _padded_vmem_bytes((1, block_m), jnp.float32))
    # Resident weight / aux blocks (Pallas still allocates 2 buffers each).
    resident = 2 * (_padded_vmem_bytes((num_inputs, H), compute_dtype)
                    + _padded_vmem_bytes((H, H), compute_dtype)
                    + _padded_vmem_bytes((4, H), jnp.float32))
    # In-kernel intermediates, lane-padded to 128:
    #   x cast, h1, h2, h2*w3 product (f32), logit column, logit row.
    inter = (_padded_vmem_bytes((block_m, num_inputs), compute_dtype)
             + 4 * _padded_vmem_bytes((block_m, H), jnp.float32)
             + _padded_vmem_bytes((block_m, 1), jnp.float32)
             + _padded_vmem_bytes((1, block_m), jnp.float32))
    return pipelined + resident + inter


def _vmem_cap_bytes():
    """Per-generation VMEM cap with headroom (~48 MiB v7x, 96 MiB v5e/v6e)."""
    try:
        phys = pltpu.get_tpu_info().vmem_capacity_bytes
    except Exception:
        phys = 64 << 20                 # conservative (v7x-sized) fallback
    return int(min(96 << 20, phys - (16 << 20)))


def _choose_tiling(B, num_inputs, H, x_dtype, compute_dtype, cap):
    """Return (B_pad, block_m).

    Large tiles amortize the ~0.35 us per-grid-step overhead; mid-size
    batches are split into >= 2 steps so v7x's two TensorCores both get
    work; block_m shrinks if the padded footprint would not fit the cap.
    """
    target = 8192 if jnp.dtype(compute_dtype).itemsize <= 2 else 4096
    if B <= 256:
        return B, B                      # single full-batch tile, no padding
    half = -(-B // 2)
    block_m = min(target, -(-half // 128) * 128)   # 128-aligned, <= target
    while (block_m > 128 and
           _vmem_need_bytes(block_m, num_inputs, H, x_dtype, compute_dtype)
           > int(0.85 * cap)):
        block_m = max(128, block_m // 2)
    b_pad = -(-B // block_m) * block_m
    return b_pad, block_m


# --------------------------------------------------------------------------
# Wrapper
# --------------------------------------------------------------------------
def discriminator_forward(x, params, *, block_m=None,
                          compute_dtype=jnp.bfloat16):
    """x: (B, num_inputs). params: dict with w1(in,H), b1(1,H), w2(H,H),
    b2(1,H), w3(1,H) [PyTorch row layout], b3(1,1). Returns (B, 1) f32.

    compute_dtype is the MXU operand dtype for the first two matmuls
    (bf16 default on all generations; accumulation stays f32). x is passed
    to the kernel in its own dtype and cast in-kernel, so no extra HBM pass.
    """
    B, num_inputs = x.shape
    H = params["w2"].shape[0]
    cap = _vmem_cap_bytes()

    if block_m is None:
        B_pad, block_m = _choose_tiling(B, num_inputs, H, x.dtype,
                                        compute_dtype, cap)
    else:
        B_pad = -(-B // block_m) * block_m
        assert block_m == B_pad or block_m % 128 == 0, (
            "lane-dense output tile requires block_m % 128 == 0 "
            "(or a single full-batch tile)")

    # Ragged batch: pad rows up to the tile multiple, slice the result.
    x_in = x if B_pad == B else jnp.pad(x, ((0, B_pad - B), (0, 0)))

    # Pack all tiny f32 params into a single (4, H) VMEM block (one DMA).
    b3_row = jnp.zeros((1, H), jnp.float32).at[0, 0].set(
        params["b3"].reshape(()).astype(jnp.float32))
    aux = jnp.concatenate(
        [params["b1"].astype(jnp.float32),
         params["b2"].astype(jnp.float32),
         params["w3"].astype(jnp.float32),
         b3_row], axis=0)                                     # (4, H)

    # Only the (tiny) weights are cast in the wrapper; x stays untouched.
    w1_c = params["w1"].astype(compute_dtype)
    w2_c = params["w2"].astype(compute_dtype)

    grid = (B_pad // block_m,)

    in_specs = [
        pl.BlockSpec((block_m, num_inputs), lambda i: (i, 0)),  # x (tiled)
        pl.BlockSpec((num_inputs, H), lambda i: (0, 0)),        # w1 (resident)
        pl.BlockSpec((H, H), lambda i: (0, 0)),                 # w2 (resident)
        pl.BlockSpec((4, H), lambda i: (0, 0)),                 # b1|b2|w3|b3
    ]
    out_specs = pl.BlockSpec((1, block_m), lambda i: (0, i))    # lane-dense

    need = _vmem_need_bytes(block_m, num_inputs, H, x.dtype, compute_dtype)
    vmem_limit = int(min(cap, max(16 << 20, int(1.5 * need))))

    out = pl.pallas_call(
        discriminator_kernel,
        out_shape=jax.ShapeDtypeStruct((1, B_pad), jnp.float32),
        grid_spec=pltpu.PrefetchScalarGridSpec(
            num_scalar_prefetch=0,
            grid=grid,
            in_specs=in_specs,
            out_specs=out_specs,
        ),
        compiler_params=pltpu.CompilerParams(
            dimension_semantics=("parallel",),
            vmem_limit_bytes=vmem_limit),
    )(x_in, w1_c, w2_c, aux)

    probs = jnp.reshape(out, (B_pad, 1))
    return probs if B_pad == B else probs[:B]


# --------------------------------------------------------------------------
# Parameters / reference
# --------------------------------------------------------------------------
def init_params(key, num_inputs, hidden_size):
    """Synthetic init mimicking weights_init (small normal weights/biases).

    PyTorch nn.Linear stores weight as (out, in); w1/w2 are pre-transposed to
    (in, out) so the kernel computes x @ W + b; w3 stays as a (1, H) row.
    """
    k1, k2, k3, k4, k5, k6 = jax.random.split(key, 6)
    w1 = jax.random.normal(k1, (hidden_size, num_inputs), jnp.float32) * 0.1
    w2 = jax.random.normal(k2, (hidden_size, hidden_size), jnp.float32) * 0.1
    w3 = jax.random.normal(k3, (1, hidden_size), jnp.float32) * 0.1
    b1 = jax.random.normal(k4, (1, hidden_size), jnp.float32) * 0.1
    b2 = jax.random.normal(k5, (1, hidden_size), jnp.float32) * 0.1
    b3 = jax.random.normal(k6, (1, 1), jnp.float32) * 0.1
    return {
        "w1": jnp.transpose(w1),   # (num_inputs, H)
        "b1": b1,                  # (1, H)
        "w2": jnp.transpose(w2),   # (H, H)
        "b2": b2,                  # (1, H)
        "w3": w3,                  # (1, H)  row layout (PyTorch (out=1, in=H))
        "b3": b3,                  # (1, 1)
    }


def reference_forward(x, params):
    h1 = jnp.tanh(x @ params["w1"] + params["b1"])
    h2 = jnp.tanh(h1 @ params["w2"] + params["b2"])
    return jax.nn.sigmoid(h2 @ jnp.transpose(params["w3"]) + params["b3"])


# --------------------------------------------------------------------------
# Tests
# --------------------------------------------------------------------------
if __name__ == "__main__":
    key = jax.random.PRNGKey(0)
    kx, kx2, kx3, kp = jax.random.split(key, 4)

    batch = 8
    num_inputs = 16
    hidden_size = 32

    x = jax.random.normal(kx, (batch, num_inputs), jnp.float32)
    params = init_params(kp, num_inputs, hidden_size)
    ref = reference_forward(x, params)

    # f32 MXU-operand path: tight tolerance.
    prob_f32 = jax.block_until_ready(
        discriminator_forward(x, params, compute_dtype=jnp.float32))
    assert prob_f32.shape == (batch, 1)
    assert jnp.allclose(prob_f32, ref, atol=1e-5, rtol=1e-5)

    # Default bf16 MXU-operand path (f32 accumulation / activations).
    prob_bf16 = jax.block_until_ready(discriminator_forward(x, params))
    assert prob_bf16.shape == (batch, 1)
    assert jnp.allclose(prob_bf16, ref, atol=2e-2)

    # Mid-size batch, f32: exercises >= 2 grid steps (block_m = 512, grid=2),
    # lane-dense 128-aligned output tiles, v7x dual-TC sharding.
    xb = jax.random.normal(kx2, (1024, num_inputs), jnp.float32)
    prob_big = jax.block_until_ready(
        discriminator_forward(xb, params, compute_dtype=jnp.float32))
    assert prob_big.shape == (1024, 1)
    assert jnp.allclose(prob_big, reference_forward(xb, params),
                        atol=1e-5, rtol=1e-5)

    # Large batch, f32: exercises the enlarged 4096-row tiles (grid=2).
    xl = jax.random.normal(kx3, (8192, num_inputs), jnp.float32)
    prob_large = jax.block_until_ready(
        discriminator_forward(xl, params, compute_dtype=jnp.float32))
    assert prob_large.shape == (8192, 1)
    assert jnp.allclose(prob_large, reference_forward(xl, params),
                        atol=1e-5, rtol=1e-5)

    # Ragged batch, default bf16: exercises wrapper-side padding + slicing.
    xr = xl[:1000]
    prob_ragged = jax.block_until_ready(discriminator_forward(xr, params))
    assert prob_ragged.shape == (1000, 1)
    assert jnp.allclose(prob_ragged, reference_forward(xr, params), atol=2e-2)

    print("KERNEL_OK")
</pallas_src>

<mosaic_0001>
module attributes {stable_mosaic.version = 11 : i64} {
  func.func @discriminator_kernel(%arg0: i32, %arg1: memref<8x16xf32, #tpu.memory_space<vmem>>, %arg2: memref<16x32xf32, #tpu.memory_space<vmem>>, %arg3: memref<32x32xf32, #tpu.memory_space<vmem>>, %arg4: memref<4x32xf32, #tpu.memory_space<vmem>>, %arg5: memref<1x8xf32, #tpu.memory_space<vmem>>) attributes {dimension_semantics = [#tpu.dimension_semantics<parallel>], iteration_bounds = array<i64: 1>, scalar_prefetch = 0 : i64, scratch_operands = 0 : i64, tpu.core_type = #tpu.core_type<tc>, window_params = [{transform_indices = @transform_0, window_bounds = array<i64: 8, 16>}, {pipeline_mode = #tpu.pipeline_mode<synchronous>, transform_indices = @transform_1, window_bounds = array<i64: 16, 32>}, {pipeline_mode = #tpu.pipeline_mode<synchronous>, transform_indices = @transform_2, window_bounds = array<i64: 32, 32>}, {pipeline_mode = #tpu.pipeline_mode<synchronous>, transform_indices = @transform_3, window_bounds = array<i64: 4, 32>}, {transform_indices = @transform_4, window_bounds = array<i64: 1, 8>}]} {
    %c0 = arith.constant 0 : index
    %c0_0 = arith.constant 0 : index
    %0 = vector.load %arg4[%c0, %c0_0] : memref<4x32xf32, #tpu.memory_space<vmem>>, vector<4x32xf32>
    %1 = vector.extract_strided_slice %0 {offsets = [0, 0], sizes = [1, 32], strides = [1, 1]} : vector<4x32xf32> to vector<1x32xf32>
    %2 = vector.extract_strided_slice %0 {offsets = [1, 0], sizes = [1, 32], strides = [1, 1]} : vector<4x32xf32> to vector<1x32xf32>
    %3 = vector.extract_strided_slice %0 {offsets = [2, 0], sizes = [1, 32], strides = [1, 1]} : vector<4x32xf32> to vector<1x32xf32>
    %4 = vector.extract_strided_slice %0 {offsets = [3, 0], sizes = [1, 1], strides = [1, 1]} : vector<4x32xf32> to vector<1x1xf32>
    %c0_1 = arith.constant 0 : index
    %c0_2 = arith.constant 0 : index
    %5 = vector.load %arg1[%c0_1, %c0_2] : memref<8x16xf32, #tpu.memory_space<vmem>>, vector<8x16xf32>
    %c0_3 = arith.constant 0 : index
    %c0_4 = arith.constant 0 : index
    %6 = vector.load %arg2[%c0_3, %c0_4] : memref<16x32xf32, #tpu.memory_space<vmem>>, vector<16x32xf32>
    %cst = arith.constant dense<0.000000e+00> : vector<8x32xf32>
    %7 = tpu.matmul %5, %6, %cst {dimension_numbers = #tpu.dot_dimension_numbers<[1], [0], [0], [1], [0, 0, 1, 1], [], []>} : vector<8x16xf32>, vector<16x32xf32>, vector<8x32xf32> -> vector<8x32xf32>
    %8 = vector.broadcast %1 : vector<1x32xf32> to vector<8x32xf32>
    %9 = arith.addf %7, %8 : vector<8x32xf32>
    %10 = math.tanh %9 : vector<8x32xf32>
    %c0_5 = arith.constant 0 : index
    %c0_6 = arith.constant 0 : index
    %11 = vector.load %arg3[%c0_5, %c0_6] : memref<32x32xf32, #tpu.memory_space<vmem>>, vector<32x32xf32>
    %cst_7 = arith.constant dense<0.000000e+00> : vector<8x32xf32>
    %12 = tpu.matmul %10, %11, %cst_7 {dimension_numbers = #tpu.dot_dimension_numbers<[1], [0], [0], [1], [0, 0, 1, 1], [], []>} : vector<8x32xf32>, vector<32x32xf32>, vector<8x32xf32> -> vector<8x32xf32>
    %13 = vector.broadcast %2 : vector<1x32xf32> to vector<8x32xf32>
    %14 = arith.addf %12, %13 : vector<8x32xf32>
    %15 = math.tanh %14 : vector<8x32xf32>
    %16 = vector.broadcast %3 : vector<1x32xf32> to vector<8x32xf32>
    %17 = arith.mulf %15, %16 : vector<8x32xf32>
    %cst_8 = arith.constant dense<0.000000e+00> : vector<8xf32>
    %18 = vector.multi_reduction <add>, %17, %cst_8 [1] : vector<8x32xf32> to vector<8xf32>
    %19 = vector.shape_cast %18 : vector<8xf32> to vector<8x1xf32>
    %20 = tpu.transpose %19, [1, 0] : vector<8x1xf32> -> vector<1x8xf32>
    %21 = vector.broadcast %4 : vector<1x1xf32> to vector<1x8xf32>
    %22 = arith.addf %20, %21 : vector<1x8xf32>
    %23 = arith.negf %22 : vector<1x8xf32>
    %24 = math.exp %23 : vector<1x8xf32>
    %cst_9 = arith.constant 1.000000e+00 : f32
    %25 = vector.broadcast %cst_9 : f32 to vector<1x8xf32>
    %26 = arith.addf %25, %24 : vector<1x8xf32>
    %27 = arith.divf %25, %26 : vector<1x8xf32>
    %c0_10 = arith.constant 0 : index
    %c0_11 = arith.constant 0 : index
    %28 = vector.load %arg5[%c0_10, %c0_11] : memref<1x8xf32, #tpu.memory_space<vmem>>, vector<1x8xf32>
    tpu.vector_store %arg5[%c0_10, %c0_11], %27 {strides = array<i32>} : memref<1x8xf32, #tpu.memory_space<vmem>>, vector<1x8xf32>,
    return
  }
  func.func @transform_0(%arg0: i32) -> (i32, i32) {
    %c0_i32 = arith.constant 0 : i32
    %c0_i32_0 = arith.constant 0 : i32
    return %arg0, %c0_i32 : i32, i32
  }
  func.func @transform_1(%arg0: i32) -> (i32, i32) {
    %c0_i32 = arith.constant 0 : i32
    %c0_i32_0 = arith.constant 0 : i32
    %c0_i32_1 = arith.constant 0 : i32
    return %c0_i32, %c0_i32_0 : i32, i32
  }
  func.func @transform_2(%arg0: i32) -> (i32, i32) {
    %c0_i32 = arith.constant 0 : i32
    %c0_i32_0 = arith.constant 0 : i32
    %c0_i32_1 = arith.constant 0 : i32
    return %c0_i32, %c0_i32_0 : i32, i32
  }
  func.func @transform_3(%arg0: i32) -> (i32, i32) {
    %c0_i32 = arith.constant 0 : i32
    %c0_i32_0 = arith.constant 0 : i32
    %c0_i32_1 = arith.constant 0 : i32
    return %c0_i32, %c0_i32_0 : i32, i32
  }
  func.func @transform_4(%arg0: i32) -> (i32, i32) {
    %c0_i32 = arith.constant 0 : i32
    %c0_i32_0 = arith.constant 0 : i32
    return %c0_i32, %arg0 : i32, i32
  }
}

</mosaic_0001>

<bundles_post_ra>
// kernel: tpu_custom_call.1
= control target key start
LH: loop header
LB: loop body
LE: loop exit
PB: predicated region body
PF: predicated region fallthrough
CT: control target
= control target key end

     0   :  { %9 = vsyncpa [#allocation3], 0  ;;  %s537_s0 = inlined_call_operand.hbm [shape: f32[8,16], index: 0, kind: input, shape index: {}]   ;;  %s538_s1 = inlined_call_operand.hbm [shape: f32[16,32], index: 1, kind: input, shape index: {}]   ;;  %s539_s2 = inlined_call_operand.hbm [shape: f32[32,32], index: 2, kind: input, shape index: {}]   ;;  %s540_s3 = inlined_call_operand.vmem [shape: f32[4,32], index: 3, kind: input, shape index: {}]   ;;  %s541_s4 = inlined_call_operand.hbm [shape: f32[1,8], index: 4, kind: output, shape index: {}]  }
   0x1   :  { %10 = vsyncpa [#allocation6], 0 }
   0x2   :  { %11 = vsyncpa [#allocation4], 0  ;;  %s445_s15 = smov [#allocation5]   ;;  %s351_s19 = scalar_lea.hbm %s538_s1, 256 }
   0x3   :  { %s27_s16 = sshll.u32 %s445_s15, 4  ;;  %p352_p0 = scmp.ne.s32.totalorder %s538_s1, %s351_s19  ;;  %s28_s16 = int_to_ptr.vmem [resolvable:$true] %s27_s16 }
   0x4   :  { %p355_p1 = scmp.lt.u32.totalorder %s351_s19, %s538_s1 }
   0x6   :  { %p357_p2 = pnand %p355_p1, %p352_p0 }
   0x8   :  { %360 = shalt.err (!%p357_p2)
}
   0x9   :  { %s361_s24 = scalar_lea.vmem %s28_s16, 256  ;;  %p366_p4 = scmp.lt.s32.totalorder %s28_s16, %s28_s16 }
   0xa   :  { %p362_p3 = scmp.ne.s32.totalorder %s28_s16, %s361_s24  ;;  %p367_p5 = scmp.lt.s32.totalorder %s361_s24, %s361_s24 }
   0xc   :  { %p368_p6 = por %p367_p5, %p366_p4 }
   0xe   :  { %p369_p7 = pnand %p368_p6, %p362_p3 }
  0x10   :  { %372 = shalt.err (!%p369_p7)
}
  0x11   :  { %s446_s25 = smov 128   ;;  %s447_s26 = smov 8  }
  0x12   :  { %33 = dma.hbm_to_vmem [thread:$0]  %s538_s1, 256, %s28_s16, [#allocation6], %s446_s25, %s446_s25, %s447_s26  }
  0x13   :  { %s448_s29 = smov [#allocation2]   ;;  %s449_s5 = smov [#allocation7]  }
  0x14   :  { %s18_s30 = sshll.u32 %s448_s29, 4  ;;  %s39_s6 = sshll.u32 %s449_s5, 4  ;;  %s19_s30 = int_to_ptr.vmem [resolvable:$true] %s18_s30  ;;  %s40_s6 = int_to_ptr.vmem [resolvable:$true] %s39_s6 }
  0x15   :  { %s373_s9 = scalar_lea.hbm %s537_s0, 128 }
  0x16   :  { %p374_p8 = scmp.ne.s32.totalorder %s537_s0, %s373_s9  ;;  %p377_p9 = scmp.lt.u32.totalorder %s373_s9, %s537_s0 }
  0x18   :  { %p379_p10 = pnand %p377_p9, %p374_p8 }
  0x1a   :  { %382 = shalt.err (!%p379_p10)
}
  0x1b   :  { %s383_s1 = scalar_lea.vmem %s19_s30, 128  ;;  %p388_p12 = scmp.lt.s32.totalorder %s19_s30, %s19_s30 }
  0x1c   :  { %p384_p11 = scmp.ne.s32.totalorder %s19_s30, %s383_s1  ;;  %p389_p13 = scmp.lt.s32.totalorder %s383_s1, %s383_s1 }
  0x1e   :  { %p390_p0 = por %p389_p13, %p388_p12 }
  0x20   :  { %p391_p1 = pnand %p390_p0, %p384_p11 }
  0x22   :  { %394 = shalt.err (!%p391_p1)
}
  0x23   :  { %21 = dma.hbm_to_vmem [thread:$0]  %s537_s0, 128, %s19_s30, [#allocation3]  }
  0x24   :  { %s395_s18 = scalar_lea.hbm %s539_s2, 512 }
  0x25   :  { %p396_p2 = scmp.ne.s32.totalorder %s539_s2, %s395_s18  ;;  %p399_p3 = scmp.lt.u32.totalorder %s395_s18, %s539_s2 }
  0x27   :  { %p401_p4 = pnand %p399_p3, %p396_p2 }
  0x29   :  { %404 = shalt.err (!%p401_p4)
}
  0x2a   :  { %s405_s23 = scalar_lea.vmem %s40_s6, 512  ;;  %p410_p6 = scmp.lt.s32.totalorder %s40_s6, %s40_s6 }
  0x2b   :  { %p406_p5 = scmp.ne.s32.totalorder %s40_s6, %s405_s23  ;;  %p411_p7 = scmp.lt.s32.totalorder %s405_s23, %s405_s23 }
  0x2d   :  { %p412_p8 = por %p411_p7, %p410_p6 }
  0x2f   :  { %p413_p9 = pnand %p412_p8, %p406_p5 }
  0x31   :  { %416 = shalt.err (!%p413_p9)
}
  0x32   :  { %45 = dma.hbm_to_vmem [thread:$0]  %s539_s2, 512, %s40_s6, [#allocation6], %s446_s25, %s446_s25, %s447_s26  }
  0x33   :  { %439 = dma.done.wait [#allocation3], 128  }
  0x34   :  { %440 = vsyncadd [#allocation3], 4294967168 }
  0x35   :  { %441 = dma.done.wait [#allocation6], 768  }
  0x36   :  { %442 = vsyncadd [#allocation6], 4294966528  ;;  %v450_v0 = vmov 0.0|0.0   ;;  %vm451_vm0 = vmmov 0   ;;  %v452_v1 = vmov 0.0   ;;  %v59_v2 = vld [vmem:[#allocation5] sm:$0xff]  ;;  %v61_v12 = vlaneseq }
  0x37   :  { %323 = vmatprep.subr.bf16.mxu0 %v450_v0  ;;  %309 = vmatprep.mubr.msk.f32.mxu0 %vm451_vm0, %v452_v1  ;;  %v60_v3 = vld [vmem:[#allocation5 + $0x8] sm:$0xff]  ;;  %v58_v5 = vld [vmem:[#allocation2] sm:$0xff]  ;;  %vm65_vm1 = vcmask 130048   ;;  %v140_v6 = vld [vmem:[#allocation7] sm:$0xff]  ;;  %vm148_vm2 = vcmask 261120   ;;  %v453_v21 = vmov 0  }
  0x38   :  { %326 = vmatprep.subr.bf16.mxu1 %v450_v0  ;;  %320 = vmatprep.mubr.msk.f32.mxu1 %vm451_vm0, %v452_v1  ;;  %v324_v4 = vpack.c.bf16 %v60_v3, %v59_v2  ;;  %v141_v7 = vld [vmem:[#allocation7 + $0x8] sm:$0xff]  ;;  %v142_v8 = vld [vmem:[#allocation7 + $0x10] sm:$0xff]  ;;  %v143_v10 = vld [vmem:[#allocation7 + $0x18] sm:$0xff]  ;;  %v62_v13 = vshrl.u32 %v61_v12, 7  ;;  %vm276_vm3 = vcmask 57344  }
  0x39   :  { %v327_v9 = vpack.c.bf16 %v141_v7, %v140_v6  ;;  %v330_v11 = vpack.c.bf16 %v143_v10, %v142_v8  ;;  %v57_v15 = vld [vmem:[%s540_s3] sm:$0xf]  ;;  %342 = vset.pattern.permute.xlu0 %v453_v21  ;;  %s454_s3 = smov [#allocation8]  }
  0x3a   :  { %325 = vmatpush3.bf16.msra.mxu0 %v324_v4  ;;  %v63_v14 = vsub.s32 0, %v62_v13  ;;  %v146_v22 = vsub.s32 1, %v62_v13  ;;  %v225_v27 = vsub.s32 2, %v62_v13  ;;  %s284_s26 = sshll.u32 %s454_s3, 4  ;;  %s285_s26 = int_to_ptr.vmem [resolvable:$true] %s284_s26 }
  0x3b   :  { %328 = vmatpush3.bf16.msra.mxu1 %v327_v9  ;;  %s417_s27 = scalar_lea.vmem %s285_s26, 16  ;;  %s421_s28 = scalar_lea.vmem %s285_s26, 32 }
  0x3c   :  { %329 = vmatprep.subr.bf16.mxu1 %v450_v0  ;;  %v64_v16 = vrot.slane %v57_v15, %v63_v14  ;;  %v147_v23 = vrot.slane %v57_v15, %v146_v22  ;;  %v226_v28 = vrot.slane %v57_v15, %v225_v27  ;;  %p418_p10 = scmp.ne.s32.totalorder %s285_s26, %s417_s27  ;;  %p422_p11 = scmp.lt.s32.totalorder %s285_s26, %s285_s26 }
  0x3d   :  { %310 = vmatmul.mubr.msk.f32.vlgmr.msra.gmra.mrb[0].mxu0 %vm65_vm1, %v58_v5  ;;  %p423_p12 = scmp.lt.s32.totalorder %s421_s28, %s417_s27 }
  0x3f   :  { %331 = vmatpush3.bf16.msra.mxu1 %v330_v11  ;;  %p424_p13 = por %p423_p12, %p422_p11 }
  0x41   :  { %p425_p0 = pnand %p424_p13, %p418_p10 }
 0x110   :  { %v135_v17 = vpop.f32.mrb[0].mxu0 }
 0x111   :  { %v136_v18 = vadd.f32 %v135_v17, %v64_v16  ;;  %v311_v19 = vpop.f32.mrb[1].mxu0 }
 0x113   :  { %343 = vtanh.f32 %v136_v18 }
 0x11d   :  { %v344_v20 = vpop.eup %343 }
 0x11e   :  { %321 = vmatmul.mubr.msk.f32.vlgmr.msra.gmra.mrb[0].mxu1 %vm148_vm2, %v344_v20 }
 0x1f1   :  { %v218_v24 = vpop.f32.mrb[0].mxu1 }
 0x1f2   :  { %v219_v25 = vadd.f32 %v218_v24, %v147_v23  ;;  %v322_v26 = vpop.f32.mrb[1].mxu1 }
 0x1f4   :  { %345 = vtanh.f32 %v219_v25 }
 0x1fe   :  { %v346_v29 = vpop.eup %345 }
 0x1ff   :  { %v227_v30 = vmul.f32 %v346_v29, %v226_v28 }
 0x201   :  { %v228_v31 = vsel %vm148_vm2, %v227_v30, 0.0 }
 0x202   :  { %229 = vadd.xlane.f32.xlu0 %v228_v31 }
 0x218   :  { %265 = vperm.xlu0 %342, %v57_v15  }
 0x28f   :  { %v230_v32 = vpop.xlane.xlu0 %229 }
 0x290   :  { %231 = vxpose.xlu1.b32.start.end [1/1] (short) (narrow) %v230_v32, 8 }
 0x297   :  { %v266_v33 = vpop.permute.xlu0 %265 }
 0x298   :  { %v267_v34 = vrot.slane %v266_v33, 3 }
 0x310   :  { %v247_v35 = vpop.trf.xlu1 }
 0x311   :  { %v269_v36 = vadd.f32 %v267_v34, %v247_v35 }
 0x313   :  { %v296_v37 = vmul.f32 -1.442695, %v269_v36 }
 0x315   :  { %347 = vpow2.f32 %v296_v37 }
 0x31f   :  { %v348_v38 = vpop.eup %347 }
 0x320   :  { %v273_v39 = vadd.f32 1.0, %v348_v38 }
 0x322   :  { %349 = vrcp.f32 %v273_v39 }
 0x32c   :  { %v350_v40 = vpop.eup %349 }
 0x32d   :  { %277 = vst.msk [vmem:[#allocation8] sm:$0x1] %vm276_vm3, %v350_v40 }
 0x32e   :  { %428 = shalt.err (!%p425_p0)
}
 0x32f   :  { %s429_s5 = scalar_lea.hbm %s541_s4, 16 }
 0x330   :  { %p430_p1 = scmp.ne.s32.totalorder %s541_s4, %s429_s5  ;;  %p433_p2 = scmp.lt.u32.totalorder %s429_s5, %s541_s4 }
 0x332   :  { %p435_p3 = pnand %p433_p2, %p430_p1 }
 0x334   :  { %438 = shalt.err (!%p435_p3)
}
 0x335   :  { %287 = dma.vmem_to_hbm [thread:$0]  %s285_s26, 16, %s541_s4, [#allocation4]  }
 0x336   :  { %443 = dma.done.wait [#allocation4], 16  }
 0x337   :  { %444 = vsyncadd [#allocation4], 4294967280 }
 0x338   :  { %291 = vsyncpa [#allocation3], 1 }
 0x339   :  { %292 = vsyncpa [#allocation6], 1 }
 0x33a   :  { %293 = vsyncpa [#allocation4], 1 }

</bundles_post_ra>
